<compile_context>
chip_gen: v7x
topology: tpu7x:2x2x1
jax: 0.10.0
libtpu: 0.0.40
codegen_flags: <defaults>
</compile_context>

<pallas_src>
import functools

import jax
import jax.numpy as jnp
from jax.experimental import pallas as pl
from jax.experimental.pallas import tpu as pltpu


_LANE = 128
_EPS = 1e-5
_MXU_REDUCE_MIN_BATCH = 512        # use MXU for BN reductions at/above this B
_VMEM = pl.BlockSpec(memory_space=pltpu.MemorySpace.VMEM)


def _round_up(n, m):
    return ((n + m - 1) // m) * m


# ---------------------------------------------------------------------------
# Fused kernel (built per num_hidden / batch; both are static)
# ---------------------------------------------------------------------------
def _make_actor_kernel(num_hidden, batch):
    use_mxu_reduce = batch >= _MXU_REDUCE_MIN_BATCH
    inv_b = 1.0 / float(batch)

    def kernel(*refs):
        # refs: x, [w, gamma, beta] * num_hidden, w_out, b_out, o_ref
        x_ref = refs[0]
        o_ref = refs[-1]
        x = x_ref[...]                                          # [B, Fin] f32
        i = 1
        for _ in range(num_hidden):
            w_ref, gamma_ref, beta_ref = refs[i], refs[i + 1], refs[i + 2]
            i += 3
            # Linear on the MXU with bf16 operands, f32 accumulation.
            # (Hidden bias folded away: BN batch-mean subtraction cancels it.)
            y = jnp.dot(x.astype(jnp.bfloat16), w_ref[...],
                        preferred_element_type=jnp.float32)     # [B, F] f32
            # BatchNorm1d over the batch axis (biased variance), eps = 1e-5,
            # gamma folded into the rsqrt scale (one fewer VPU mul).
            if use_mxu_reduce:
                # Large batch: ride the idle MXU for the column reductions
                # instead of two axis-0 XLU/VPU passes.
                ones = jnp.ones((1, batch), jnp.float32)
                mean = jnp.dot(ones, y,
                               preferred_element_type=jnp.float32) * inv_b
                mean_sq = jnp.dot(ones, y * y,
                                  preferred_element_type=jnp.float32) * inv_b
                var = jnp.maximum(mean_sq - mean * mean, 0.0)
                c = y - mean
            else:
                mean = jnp.mean(y, axis=0, keepdims=True)       # [1, F]
                c = y - mean
                var = jnp.mean(c * c, axis=0, keepdims=True)
            scale = gamma_ref[...] * jax.lax.rsqrt(var + _EPS)  # rsqrt -> EUP
            x = jnp.maximum(c * scale + beta_ref[...], 0.0)     # ReLU (f32)
        w_out_ref, b_out_ref = refs[i], refs[i + 1]
        y = jnp.dot(x.astype(jnp.bfloat16), w_out_ref[...],
                    preferred_element_type=jnp.float32)
        o_ref[...] = jnp.tanh(y + b_out_ref[...])               # tanh -> EUP

    return kernel


# ---------------------------------------------------------------------------
# Parameters (mirrors the PyTorch Actor init) + padding / dtype prep
# ---------------------------------------------------------------------------
def init_actor_params(key, state_size, action_size, hidden_layers):
    """Deterministic synthetic init matching the PyTorch shapes/ranges."""
    params = {"hidden": [], "output": None}
    dims = [state_size] + list(hidden_layers)
    for fin, fout in zip(dims[:-1], dims[1:]):
        key, kw, kb = jax.random.split(key, 3)
        # hidden_init() in the reference uses weight.size()[0] == out_features.
        lim_w = 1.0 / jnp.sqrt(jnp.float32(fout))
        lim_b = 1.0 / jnp.sqrt(jnp.float32(fin))   # default nn.Linear bias init
        w = jax.random.uniform(kw, (fin, fout), jnp.float32, -lim_w, lim_w)
        b = jax.random.uniform(kb, (1, fout), jnp.float32, -lim_b, lim_b)
        gamma = jnp.ones((1, fout), jnp.float32)   # BatchNorm1d weight
        beta = jnp.zeros((1, fout), jnp.float32)   # BatchNorm1d bias
        params["hidden"].append((w, b, gamma, beta))
    key, kw, kb = jax.random.split(key, 3)
    fin = dims[-1]
    w_out = jax.random.uniform(kw, (fin, action_size), jnp.float32, -0.003, 0.003)
    lim_b = 1.0 / jnp.sqrt(jnp.float32(fin))
    b_out = jax.random.uniform(kb, (1, action_size), jnp.float32, -lim_b, lim_b)
    params["output"] = (w_out, b_out)
    return params


def prepare_padded_params(params):
    """Zero-pad every *output* feature dim up to a multiple of 128, keep the
    first layer's K (= state_size) unpadded, drop the hidden Linear biases
    (exact under batch-stat BatchNorm) and store matmul weights as bf16."""
    padded = {"hidden": [], "output": None}
    prev_out_pad = None
    for (w, _b, gamma, beta) in params["hidden"]:
        fin, fout = w.shape
        pin = fin if prev_out_pad is None else prev_out_pad
        pout = _round_up(fout, _LANE)
        w_p = jnp.zeros((pin, pout), jnp.float32).at[:fin, :fout].set(w)
        w_p = w_p.astype(jnp.bfloat16)
        g_p = jnp.zeros((1, pout), jnp.float32).at[:, :fout].set(gamma)
        be_p = jnp.zeros((1, pout), jnp.float32).at[:, :fout].set(beta)
        padded["hidden"].append((w_p, g_p, be_p))
        prev_out_pad = pout
    w_out, b_out = params["output"]
    fin, fout = w_out.shape
    pin, pout = prev_out_pad, _round_up(fout, _LANE)
    w_p = jnp.zeros((pin, pout), jnp.float32).at[:fin, :fout].set(w_out)
    w_p = w_p.astype(jnp.bfloat16)
    b_p = jnp.zeros((1, pout), jnp.float32).at[:, :fout].set(b_out)
    padded["output"] = (w_p, b_p)
    return padded


# ---------------------------------------------------------------------------
# Fused forward (single pallas_call, jitted)
# ---------------------------------------------------------------------------
@functools.partial(jax.jit, static_argnames=("action_size",))
def actor_forward(padded_params, x, *, action_size):
    # BatchNorm training semantics require batch >= 2 (as in PyTorch).
    B = x.shape[0]
    if B < 2:
        raise ValueError("Actor forward with BatchNorm batch stats needs B >= 2")

    flat_inputs = [x.astype(jnp.float32)]          # [B, state_size], unpadded
    for (w, g, be) in padded_params["hidden"]:
        flat_inputs.extend((w, g, be))
    w_out, b_out = padded_params["output"]
    flat_inputs.extend((w_out, b_out))
    out_width = w_out.shape[1]                     # lane-dense padded width

    # VMEM budget: all inputs + output + a few f32 activation-sized temps.
    max_feat = max(w.shape[1] for (w, _g, _be) in padded_params["hidden"])
    max_feat = max(max_feat, out_width)
    footprint = sum(a.size * a.dtype.itemsize for a in flat_inputs)
    footprint += B * out_width * 4                 # output block
    footprint += 4 * B * max_feat * 4              # live f32 temporaries
    vmem_limit = min(max(2 * footprint + (8 << 20), 16 << 20), 64 << 20)

    kernel = _make_actor_kernel(len(padded_params["hidden"]), B)
    out = pl.pallas_call(
        kernel,
        out_shape=jax.ShapeDtypeStruct((B, out_width), jnp.float32),
        in_specs=[_VMEM] * len(flat_inputs),
        out_specs=_VMEM,
        compiler_params=pltpu.CompilerParams(vmem_limit_bytes=vmem_limit),
    )(*flat_inputs)
    return out[:, :action_size]


# ---------------------------------------------------------------------------
# Reference (pure JAX f32, unpadded, includes the hidden biases)
# ---------------------------------------------------------------------------
def actor_forward_ref(params, x):
    for (w, b, gamma, beta) in params["hidden"]:
        y = x @ w + b
        mean = jnp.mean(y, axis=0, keepdims=True)
        var = jnp.mean((y - mean) ** 2, axis=0, keepdims=True)
        y = (y - mean) * jax.lax.rsqrt(var + _EPS) * gamma + beta
        x = jnp.maximum(y, 0.0)
    w_out, b_out = params["output"]
    return jnp.tanh(x @ w_out + b_out)


if __name__ == "__main__":
    # Small, Tennis-like configuration (kept small for the smoke test;
    # for best MXU utilization run with B >= 128 per call).
    state_size = 24
    action_size = 2
    hidden_layers = [32, 32]
    batch = 8

    key = jax.random.PRNGKey(0)
    key, k_params, k_x = jax.random.split(key, 3)

    params = init_actor_params(k_params, state_size, action_size, hidden_layers)
    padded_params = prepare_padded_params(params)
    x = jax.random.normal(k_x, (batch, state_size), jnp.float32)

    out = actor_forward(padded_params, x, action_size=action_size)
    out = jax.block_until_ready(out)

    ref = actor_forward_ref(params, x)
    assert out.shape == (batch, action_size)
    # bf16 matmul operands (f32 accumulation) -> slightly looser tolerance.
    assert jnp.allclose(out, ref, atol=2e-2, rtol=2e-2), "mismatch vs reference"

    print("KERNEL_OK")
</pallas_src>

<mosaic_0001>
module attributes {stable_mosaic.version = 11 : i64} {
  func.func @kernel(%arg0: memref<8x24xf32, #tpu.memory_space<vmem>>, %arg1: memref<24x128xbf16, #tpu.memory_space<vmem>>, %arg2: memref<1x128xf32, #tpu.memory_space<vmem>>, %arg3: memref<1x128xf32, #tpu.memory_space<vmem>>, %arg4: memref<128x128xbf16, #tpu.memory_space<vmem>>, %arg5: memref<1x128xf32, #tpu.memory_space<vmem>>, %arg6: memref<1x128xf32, #tpu.memory_space<vmem>>, %arg7: memref<128x128xbf16, #tpu.memory_space<vmem>>, %arg8: memref<1x128xf32, #tpu.memory_space<vmem>>, %arg9: memref<8x128xf32, #tpu.memory_space<vmem>>) attributes {dimension_semantics = [], scalar_prefetch = 0 : i64, scratch_operands = 0 : i64, tpu.core_type = #tpu.core_type<tc>} {
    %c0 = arith.constant 0 : index
    %c0_0 = arith.constant 0 : index
    %0 = vector.load %arg0[%c0, %c0_0] : memref<8x24xf32, #tpu.memory_space<vmem>>, vector<8x24xf32>
    %1 = arith.truncf %0 : vector<8x24xf32> to vector<8x24xbf16>
    %c0_1 = arith.constant 0 : index
    %c0_2 = arith.constant 0 : index
    %2 = vector.load %arg1[%c0_1, %c0_2] : memref<24x128xbf16, #tpu.memory_space<vmem>>, vector<24x128xbf16>
    %cst = arith.constant dense<0.000000e+00> : vector<8x128xf32>
    %3 = tpu.matmul %1, %2, %cst {dimension_numbers = #tpu.dot_dimension_numbers<[1], [0], [0], [1], [0, 0, 1, 1], [], []>} : vector<8x24xbf16>, vector<24x128xbf16>, vector<8x128xf32> -> vector<8x128xf32>
    %cst_3 = arith.constant dense<0.000000e+00> : vector<128xf32>
    %4 = vector.multi_reduction <add>, %3, %cst_3 [0] : vector<8x128xf32> to vector<128xf32>
    %5 = vector.shape_cast %4 : vector<128xf32> to vector<1x128xf32>
    %cst_4 = arith.constant 8.000000e+00 : f32
    %6 = vector.broadcast %cst_4 : f32 to vector<1x128xf32>
    %7 = arith.divf %5, %6 : vector<1x128xf32>
    %8 = vector.broadcast %7 : vector<1x128xf32> to vector<8x128xf32>
    %9 = arith.subf %3, %8 : vector<8x128xf32>
    %10 = arith.mulf %9, %9 : vector<8x128xf32>
    %cst_5 = arith.constant dense<0.000000e+00> : vector<128xf32>
    %11 = vector.multi_reduction <add>, %10, %cst_5 [0] : vector<8x128xf32> to vector<128xf32>
    %12 = vector.shape_cast %11 : vector<128xf32> to vector<1x128xf32>
    %cst_6 = arith.constant 8.000000e+00 : f32
    %13 = vector.broadcast %cst_6 : f32 to vector<1x128xf32>
    %14 = arith.divf %12, %13 : vector<1x128xf32>
    %c0_7 = arith.constant 0 : index
    %c0_8 = arith.constant 0 : index
    %15 = vector.load %arg2[%c0_7, %c0_8] : memref<1x128xf32, #tpu.memory_space<vmem>>, vector<1x128xf32>
    %cst_9 = arith.constant 9.99999974E-6 : f32
    %16 = vector.broadcast %cst_9 : f32 to vector<1x128xf32>
    %17 = arith.addf %14, %16 : vector<1x128xf32>
    %18 = math.rsqrt %17 : vector<1x128xf32>
    %19 = arith.mulf %15, %18 : vector<1x128xf32>
    %20 = vector.broadcast %19 : vector<1x128xf32> to vector<8x128xf32>
    %21 = arith.mulf %9, %20 : vector<8x128xf32>
    %c0_10 = arith.constant 0 : index
    %c0_11 = arith.constant 0 : index
    %22 = vector.load %arg3[%c0_10, %c0_11] : memref<1x128xf32, #tpu.memory_space<vmem>>, vector<1x128xf32>
    %23 = vector.broadcast %22 : vector<1x128xf32> to vector<8x128xf32>
    %24 = arith.addf %21, %23 : vector<8x128xf32>
    %cst_12 = arith.constant 0.000000e+00 : f32
    %25 = vector.broadcast %cst_12 : f32 to vector<8x128xf32>
    %26 = arith.maximumf %24, %25 : vector<8x128xf32>
    %27 = arith.truncf %26 : vector<8x128xf32> to vector<8x128xbf16>
    %c0_13 = arith.constant 0 : index
    %c0_14 = arith.constant 0 : index
    %28 = vector.load %arg4[%c0_13, %c0_14] : memref<128x128xbf16, #tpu.memory_space<vmem>>, vector<128x128xbf16>
    %cst_15 = arith.constant dense<0.000000e+00> : vector<8x128xf32>
    %29 = tpu.matmul %27, %28, %cst_15 {dimension_numbers = #tpu.dot_dimension_numbers<[1], [0], [0], [1], [0, 0, 1, 1], [], []>} : vector<8x128xbf16>, vector<128x128xbf16>, vector<8x128xf32> -> vector<8x128xf32>
    %cst_16 = arith.constant dense<0.000000e+00> : vector<128xf32>
    %30 = vector.multi_reduction <add>, %29, %cst_16 [0] : vector<8x128xf32> to vector<128xf32>
    %31 = vector.shape_cast %30 : vector<128xf32> to vector<1x128xf32>
    %cst_17 = arith.constant 8.000000e+00 : f32
    %32 = vector.broadcast %cst_17 : f32 to vector<1x128xf32>
    %33 = arith.divf %31, %32 : vector<1x128xf32>
    %34 = vector.broadcast %33 : vector<1x128xf32> to vector<8x128xf32>
    %35 = arith.subf %29, %34 : vector<8x128xf32>
    %36 = arith.mulf %35, %35 : vector<8x128xf32>
    %cst_18 = arith.constant dense<0.000000e+00> : vector<128xf32>
    %37 = vector.multi_reduction <add>, %36, %cst_18 [0] : vector<8x128xf32> to vector<128xf32>
    %38 = vector.shape_cast %37 : vector<128xf32> to vector<1x128xf32>
    %cst_19 = arith.constant 8.000000e+00 : f32
    %39 = vector.broadcast %cst_19 : f32 to vector<1x128xf32>
    %40 = arith.divf %38, %39 : vector<1x128xf32>
    %c0_20 = arith.constant 0 : index
    %c0_21 = arith.constant 0 : index
    %41 = vector.load %arg5[%c0_20, %c0_21] : memref<1x128xf32, #tpu.memory_space<vmem>>, vector<1x128xf32>
    %cst_22 = arith.constant 9.99999974E-6 : f32
    %42 = vector.broadcast %cst_22 : f32 to vector<1x128xf32>
    %43 = arith.addf %40, %42 : vector<1x128xf32>
    %44 = math.rsqrt %43 : vector<1x128xf32>
    %45 = arith.mulf %41, %44 : vector<1x128xf32>
    %46 = vector.broadcast %45 : vector<1x128xf32> to vector<8x128xf32>
    %47 = arith.mulf %35, %46 : vector<8x128xf32>
    %c0_23 = arith.constant 0 : index
    %c0_24 = arith.constant 0 : index
    %48 = vector.load %arg6[%c0_23, %c0_24] : memref<1x128xf32, #tpu.memory_space<vmem>>, vector<1x128xf32>
    %49 = vector.broadcast %48 : vector<1x128xf32> to vector<8x128xf32>
    %50 = arith.addf %47, %49 : vector<8x128xf32>
    %cst_25 = arith.constant 0.000000e+00 : f32
    %51 = vector.broadcast %cst_25 : f32 to vector<8x128xf32>
    %52 = arith.maximumf %50, %51 : vector<8x128xf32>
    %53 = arith.truncf %52 : vector<8x128xf32> to vector<8x128xbf16>
    %c0_26 = arith.constant 0 : index
    %c0_27 = arith.constant 0 : index
    %54 = vector.load %arg7[%c0_26, %c0_27] : memref<128x128xbf16, #tpu.memory_space<vmem>>, vector<128x128xbf16>
    %cst_28 = arith.constant dense<0.000000e+00> : vector<8x128xf32>
    %55 = tpu.matmul %53, %54, %cst_28 {dimension_numbers = #tpu.dot_dimension_numbers<[1], [0], [0], [1], [0, 0, 1, 1], [], []>} : vector<8x128xbf16>, vector<128x128xbf16>, vector<8x128xf32> -> vector<8x128xf32>
    %c0_29 = arith.constant 0 : index
    %c0_30 = arith.constant 0 : index
    %56 = vector.load %arg8[%c0_29, %c0_30] : memref<1x128xf32, #tpu.memory_space<vmem>>, vector<1x128xf32>
    %57 = vector.broadcast %56 : vector<1x128xf32> to vector<8x128xf32>
    %58 = arith.addf %55, %57 : vector<8x128xf32>
    %59 = math.tanh %58 : vector<8x128xf32>
    %c0_31 = arith.constant 0 : index
    %c0_32 = arith.constant 0 : index
    %60 = vector.load %arg9[%c0_31, %c0_32] : memref<8x128xf32, #tpu.memory_space<vmem>>, vector<8x128xf32>
    tpu.vector_store %arg9[%c0_31, %c0_32], %59 {strides = array<i32>} : memref<8x128xf32, #tpu.memory_space<vmem>>, vector<8x128xf32>,
    return
  }
}

</mosaic_0001>

<bundles_post_ra>
// kernel: actor_forward.1
= control target key start
LH: loop header
LB: loop body
LE: loop exit
PB: predicated region body
PF: predicated region fallthrough
CT: control target
= control target key end

     0   :  { %14 = vsyncpa [#allocation3], 0  ;;  %s780_s0 = inlined_call_operand.vmem [shape: f32[8,24], index: 0, kind: input, shape index: {}]   ;;  %s781_s1 = inlined_call_operand.hbm [shape: bf16[24,128], index: 1, kind: input, shape index: {}]   ;;  %s782_s2 = inlined_call_operand.vmem [shape: f32[1,128], index: 2, kind: input, shape index: {}]   ;;  %s783_s3 = inlined_call_operand.vmem [shape: f32[1,128], index: 3, kind: input, shape index: {}]   ;;  %s784_s4 = inlined_call_operand.hbm [shape: bf16[128,128], index: 4, kind: input, shape index: {}]   ;;  %s785_s5 = inlined_call_operand.vmem [shape: f32[1,128], index: 5, kind: input, shape index: {}]   ;;  %s786_s6 = inlined_call_operand.vmem [shape: f32[1,128], index: 6, kind: input, shape index: {}]   ;;  %s787_s7 = inlined_call_operand.hbm [shape: bf16[128,128], index: 7, kind: input, shape index: {}]   ;;  %s788_s8 = inlined_call_operand.vmem [shape: f32[1,128], index: 8, kind: input, shape index: {}]   ;;  %s789_s9 = inlined_call_operand.vmem [shape: f32[8,128], index: 9, kind: output, shape index: {}]  }
   0x1   :  { %15 = vsyncpa [#allocation5], 0  ;;  %s626_s30 = smov [#allocation4]   ;;  %s627_s11 = smov [#allocation2]  }
   0x2   :  { %s39_s10 = sshll.u32 %s626_s30, 4  ;;  %s23_s12 = sshll.u32 %s627_s11, 4  ;;  %s40_s10 = int_to_ptr.vmem [resolvable:$true] %s39_s10  ;;  %s683_s12 = int_to_ptr.vmem [resolvable:$true] %s23_s12 }
   0x3   :  { %s556_s15 = scalar_lea.hbm %s784_s4, 1024 }
   0x4   :  { %p557_p0 = scmp.ne.s32.totalorder %s784_s4, %s556_s15  ;;  %p560_p1 = scmp.lt.u32.totalorder %s556_s15, %s784_s4 }
   0x6   :  { %p562_p2 = pnand %p560_p1, %p557_p0 }
   0x8   :  { %565 = shalt.err (!%p562_p2)
}
   0x9   :  { %s566_s20 = scalar_lea.vmem %s40_s10, 1024  ;;  %p571_p4 = scmp.lt.s32.totalorder %s40_s10, %s40_s10 }
   0xa   :  { %p567_p3 = scmp.ne.s32.totalorder %s40_s10, %s566_s20  ;;  %p572_p5 = scmp.lt.s32.totalorder %s566_s20, %s566_s20 }
   0xc   :  { %p573_p6 = por %p572_p5, %p571_p4 }
   0xe   :  { %p574_p7 = pnand %p573_p6, %p567_p3 }
  0x10   :  { %577 = shalt.err (!%p574_p7)
}
  0x11   :  { %s628_s21 = smov 64   ;;  %s629_s22 = smov 4  }
  0x12   :  { %45 = dma.hbm_to_vmem [thread:$0]  %s784_s4, 1024, %s40_s10, [#allocation5], %s628_s21, %s628_s21, %s629_s22  }
  0x13   :  { %s578_s27 = scalar_lea.hbm %s781_s1, 192 }
  0x14   :  { %p579_p8 = scmp.ne.s32.totalorder %s781_s1, %s578_s27  ;;  %p582_p9 = scmp.lt.u32.totalorder %s578_s27, %s781_s1 }
  0x16   :  { %p584_p10 = pnand %p582_p9, %p579_p8 }
  0x18   :  { %587 = shalt.err (!%p584_p10)
}
  0x19   :  { %s588_s13 = scalar_lea.vmem %s683_s12, 192  ;;  %p593_p12 = scmp.lt.s32.totalorder %s683_s12, %s683_s12 }
  0x1a   :  { %p589_p11 = scmp.ne.s32.totalorder %s683_s12, %s588_s13  ;;  %p594_p13 = scmp.lt.s32.totalorder %s588_s13, %s588_s13 }
  0x1c   :  { %p595_p0 = por %p594_p13, %p593_p12 }
  0x1e   :  { %p596_p1 = pnand %p595_p0, %p589_p11 }
  0x20   :  { %599 = shalt.err (!%p596_p1)
}
  0x21   :  { %29 = dma.hbm_to_vmem [thread:$0]  %s781_s1, 192, %s683_s12, [#allocation3], %s628_s21, %s628_s21, %s629_s22  }
  0x22   :  { %s630_s14 = smov [#allocation6]   ;;  %s600_s18 = scalar_lea.hbm %s787_s7, 1024 }
  0x23   :  { %s55_s15 = sshll.u32 %s630_s14, 4  ;;  %p601_p2 = scmp.ne.s32.totalorder %s787_s7, %s600_s18  ;;  %s56_s15 = int_to_ptr.vmem [resolvable:$true] %s55_s15 }
  0x24   :  { %p604_p3 = scmp.lt.u32.totalorder %s600_s18, %s787_s7 }
  0x26   :  { %p606_p4 = pnand %p604_p3, %p601_p2 }
  0x28   :  { %609 = shalt.err (!%p606_p4)
}
  0x29   :  { %s610_s25 = scalar_lea.vmem %s56_s15, 1024  ;;  %p615_p6 = scmp.lt.s32.totalorder %s56_s15, %s56_s15 }
  0x2a   :  { %p611_p5 = scmp.ne.s32.totalorder %s56_s15, %s610_s25  ;;  %p616_p7 = scmp.lt.s32.totalorder %s610_s25, %s610_s25 }
  0x2c   :  { %p617_p8 = por %p616_p7, %p615_p6 }
  0x2e   :  { %p618_p9 = pnand %p617_p8, %p611_p5 }
  0x30   :  { %621 = shalt.err (!%p618_p9)
}
  0x31   :  { %61 = dma.hbm_to_vmem [thread:$0]  %s787_s7, 1024, %s56_s15, [#allocation5], %s628_s21, %s628_s21, %s629_s22  }
  0x32   :  { %622 = dma.done.wait [#allocation3], 192  }
  0x33   :  { %623 = vsyncadd [#allocation3], 4294967104 }
  0x34   :  { %624 = dma.done.wait [#allocation5], 2048  }
  0x35   :  { %625 = vsyncadd [#allocation5], 4294965248  ;;  %v631_v0 = vmov 0.0   ;;  %vm632_vm0 = vmmov 0   ;;  %v532_v1 = vld [vmem:[#allocation2] sm:$0xff]   ;;  %vm92_vm1 = vcmask 1043456   ;;  %v158_v35 = vlaneseq }
  0x36   :  { %477 = vmatprep.subr.bf16.mxu0 %v631_v0  ;;  %481 = vmatprep.mubr.msk.bf16.mxu0 %vm632_vm0, %v631_v0  ;;  %v533_v2 = vld [vmem:[#allocation2 + $0x8] ss:$0 sps:$4 sm:$0xff]   ;;  %v74_v3 = vld [vmem:[%s780_s0] sm:$0xff]  ;;  %vm88_vm2 = vcmask 195584   ;;  %v534_v6 = vld [vmem:[#allocation4] sm:$0xff]  }
  0x37   :  { %485 = vmatprep.subr.bf16.mxu1 %v631_v0  ;;  %501 = vmatprep.mubr.msk.bf16.mxu1 %vm632_vm0, %v631_v0  ;;  %v94_v4 = vsel %vm92_vm1, %v533_v2, 0  ;;  %v75_v5 = vpack.c.bf16 %v74_v3, %v74_v3  ;;  %v535_v7 = vld [vmem:[#allocation4 + $0x8] sm:$0xff]   ;;  %v536_v8 = vld [vmem:[#allocation4 + $0x10] sm:$0xff]   ;;  %v537_v9 = vld [vmem:[#allocation4 + $0x18] sm:$0xff]   ;;  %v159_v36 = vshrl.u32 %v158_v35, 7 }
  0x38   :  { %478 = vmatpush3.bf16.msra.mxu0 %v532_v1  ;;  %486 = vmatpush3.bf16.msra.mxu1 %v534_v6  ;;  %v538_v10 = vld [vmem:[#allocation4 + $0x20] sm:$0xff]   ;;  %v539_v11 = vld [vmem:[#allocation4 + $0x28] sm:$0xff]   ;;  %v540_v12 = vld [vmem:[#allocation4 + $0x30] sm:$0xff]  }
  0x39   :  { %479 = vmatprep.subr.bf16.mxu0 %v631_v0  ;;  %487 = vmatprep.subr.bf16.mxu1 %v631_v0  ;;  %v541_v13 = vld [vmem:[#allocation4 + $0x38] sm:$0xff]   ;;  %v153_v37 = vld [vmem:[%s782_s2] sm:$0x1]  ;;  %v160_v38 = vsub.s32 0, %v159_v36  ;;  %v542_v47 = vld [vmem:[#allocation6] sm:$0xff]  }
  0x3a   :  { %v437_v42 = vld [vmem:[%s783_s3] ss:$0 sm:$0xff]  ;;  %v543_v48 = vld [vmem:[#allocation6 + $0x8] sm:$0xff]   ;;  %v545_v50 = vld [vmem:[#allocation6 + $0x18] sm:$0xff]  }
  0x3b   :  { %v544_v49 = vld [vmem:[#allocation6 + $0x10] sm:$0xff]   ;;  %v546_v51 = vld [vmem:[#allocation6 + $0x20] sm:$0xff]   ;;  %v547_v52 = vld [vmem:[#allocation6 + $0x28] sm:$0xff]  }
  0x3c   :  { %480 = vmatpush3.bf16.msra.mxu0 %v94_v4  ;;  %488 = vmatpush3.bf16.msra.mxu1 %v535_v7  ;;  %v548_v53 = vld [vmem:[#allocation6 + $0x30] sm:$0xff]   ;;  %v549_v54 = vld [vmem:[#allocation6 + $0x38] sm:$0xff]  }
  0x3d   :  { %505 = vmatprep.subr.bf16.mxu0 %v631_v0  ;;  %489 = vmatprep.subr.bf16.mxu1 %v631_v0 }
  0x3f   :  { %482 = vmatmul.mubr.msk.bf16.vlgmr.msra.gmra.mrb[0].mxu0 %vm88_vm2, %v75_v5 }
  0x40   :  { %521 = vmatprep.mubr.msk.bf16.mxu0 %vm632_vm0, %v631_v0  ;;  %490 = vmatpush3.bf16.msra.mxu1 %v536_v8 }
  0x41   :  { %491 = vmatprep.subr.bf16.mxu1 %v631_v0  ;;  %506 = vmatpush3.bf16.msra.mxu0 %v542_v47 }
  0x42   :  { %507 = vmatprep.subr.bf16.mxu0 %v631_v0 }
  0x44   :  { %492 = vmatpush3.bf16.msra.mxu1 %v537_v9 }
  0x45   :  { %493 = vmatprep.subr.bf16.mxu1 %v631_v0  ;;  %508 = vmatpush3.bf16.msra.mxu0 %v543_v48 }
  0x46   :  { %509 = vmatprep.subr.bf16.mxu0 %v631_v0 }
  0x48   :  { %494 = vmatpush3.bf16.msra.mxu1 %v538_v10 }
  0x49   :  { %495 = vmatprep.subr.bf16.mxu1 %v631_v0  ;;  %510 = vmatpush3.bf16.msra.mxu0 %v544_v49 }
  0x4a   :  { %511 = vmatprep.subr.bf16.mxu0 %v631_v0 }
  0x4c   :  { %496 = vmatpush3.bf16.msra.mxu1 %v539_v11 }
  0x4d   :  { %497 = vmatprep.subr.bf16.mxu1 %v631_v0  ;;  %512 = vmatpush3.bf16.msra.mxu0 %v545_v50 }
  0x4e   :  { %513 = vmatprep.subr.bf16.mxu0 %v631_v0 }
  0x50   :  { %498 = vmatpush3.bf16.msra.mxu1 %v540_v12  ;;  %v294_v12 = vld [vmem:[%s785_s5] sm:$0x1] }
  0x51   :  { %499 = vmatprep.subr.bf16.mxu1 %v631_v0  ;;  %514 = vmatpush3.bf16.msra.mxu0 %v546_v51 }
  0x52   :  { %515 = vmatprep.subr.bf16.mxu0 %v631_v0 }
  0x54   :  { %500 = vmatpush3.bf16.msra.mxu1 %v541_v13 }
  0x55   :  { %516 = vmatpush3.bf16.msra.mxu0 %v547_v52 }
  0x56   :  { %517 = vmatprep.subr.bf16.mxu0 %v631_v0 }
  0x59   :  { %518 = vmatpush3.bf16.msra.mxu0 %v548_v53 }
  0x5a   :  { %519 = vmatprep.subr.bf16.mxu0 %v631_v0 }
  0x5d   :  { %520 = vmatpush3.bf16.msra.mxu0 %v549_v54 }
 0x112   :  { %v130_v14 = vpop.f32.mrb[0].mxu0 }
 0x113   :  { %v136_v15 = vrot.slane %v130_v14, 4  ;;  %v483_v16 = vpop.f32.mrb[1].mxu0 }
 0x114   :  { %v133_v17 = vpop.f32.mrb[2].mxu0  ;;  %v446_v16 = vld [vmem:[%s786_s6] ss:$0 sm:$0xff] }
 0x115   :  { %v137_v18 = vadd.f32 %v136_v15, %v130_v14  ;;  %v484_v19 = vpop.f32.mrb[3].mxu0 }
 0x117   :  { %v138_v20 = vrot.slane %v137_v18, 2 }
 0x119   :  { %v139_v21 = vadd.f32 %v138_v20, %v137_v18 }
 0x11b   :  { %v140_v22 = vrot.slane %v139_v21, 1 }
 0x11d   :  { %v141_v23 = vadd.f32 %v140_v22, %v139_v21  ;;  %v447_v21 = vld [vmem:[%s788_s8] ss:$0 sm:$0xff] }
 0x11f   :  { %v143_v24 = vmul.f32 0.125, %v141_v23 }
 0x121   :  { %v144_v25 = vsub.f32 %v130_v14, %v143_v24 }
 0x123   :  { %v145_v26 = vmul.f32 %v144_v25, %v144_v25 }
 0x125   :  { %v146_v27 = vrot.slane %v145_v26, 4 }
 0x127   :  { %v147_v28 = vadd.f32 %v146_v27, %v145_v26 }
 0x129   :  { %v148_v29 = vrot.slane %v147_v28, 2 }
 0x12b   :  { %v149_v30 = vadd.f32 %v148_v29, %v147_v28 }
 0x12d   :  { %v150_v31 = vrot.slane %v149_v30, 1 }
 0x12f   :  { %v151_v32 = vadd.f32 %v150_v31, %v149_v30 }
 0x131   :  { %v152_v33 = vmul.f32 0.125, %v151_v32 }
 0x133   :  { %v154_v34 = vadd.f32 1e-05, %v152_v33 }
 0x135   :  { %550 = vrsqrt.f32 %v154_v34 }
 0x13f   :  { %v551_v39 = vpop.eup %550 }
 0x140   :  { %v156_v40 = vmul.f32 %v551_v39, %v153_v37 }
 0x142   :  { %v161_v41 = vrot.slane %v156_v40, %v160_v38 }
 0x144   :  { %v163_v43 = vmul.f32 %v161_v41, %v144_v25 }
 0x146   :  { %v171_v44 = vadd.f32 %v437_v42, %v163_v43 }
 0x148   :  { %v172_v45 = vmax.f32 %v171_v44, 0.0 }
 0x14a   :  { %v173_v46 = vpack.c.bf16 %v172_v45, %v172_v45 }
 0x14c   :  { %502 = vmatmul.mubr.bf16.vlgmr.msra.gmra.mrb[0].mxu1 %v173_v46 }
 0x21f   :  { %v272_v55 = vpop.f32.mrb[0].mxu1 }
 0x220   :  { %v278_v56 = vrot.slane %v272_v55, 4  ;;  %v503_v57 = vpop.f32.mrb[1].mxu1 }
 0x221   :  { %v275_v58 = vpop.f32.mrb[2].mxu1 }
 0x222   :  { %v279_v59 = vadd.f32 %v278_v56, %v272_v55  ;;  %v504_v60 = vpop.f32.mrb[3].mxu1 }
 0x224   :  { %v280_v61 = vrot.slane %v279_v59, 2 }
 0x226   :  { %v281_v62 = vadd.f32 %v280_v61, %v279_v59 }
 0x228   :  { %v282_v63 = vrot.slane %v281_v62, 1 }
 0x22a   :  { %v283_v1 = vadd.f32 %v282_v63, %v281_v62 }
 0x22c   :  { %v284_v2 = vmul.f32 0.125, %v283_v1 }
 0x22e   :  { %v285_v3 = vsub.f32 %v272_v55, %v284_v2 }
 0x230   :  { %v286_v4 = vmul.f32 %v285_v3, %v285_v3 }
 0x232   :  { %v287_v5 = vrot.slane %v286_v4, 4 }
 0x234   :  { %v288_v6 = vadd.f32 %v287_v5, %v286_v4 }
 0x236   :  { %v289_v7 = vrot.slane %v288_v6, 2 }
 0x238   :  { %v290_v8 = vadd.f32 %v289_v7, %v288_v6 }
 0x23a   :  { %v291_v0 = vrot.slane %v290_v8, 1 }
 0x23c   :  { %v292_v9 = vadd.f32 %v291_v0, %v290_v8 }
 0x23e   :  { %v293_v10 = vmul.f32 0.125, %v292_v9 }
 0x240   :  { %v295_v11 = vadd.f32 1e-05, %v293_v10 }
 0x242   :  { %552 = vrsqrt.f32 %v295_v11 }
 0x24c   :  { %v553_v13 = vpop.eup %552 }
 0x24d   :  { %v297_v14 = vmul.f32 %v553_v13, %v294_v12 }
 0x24f   :  { %v302_v15 = vrot.slane %v297_v14, %v160_v38 }
 0x251   :  { %v304_v17 = vmul.f32 %v302_v15, %v285_v3 }
 0x253   :  { %v312_v18 = vadd.f32 %v446_v16, %v304_v17 }
 0x255   :  { %v313_v19 = vmax.f32 %v312_v18, 0.0 }
 0x257   :  { %v314_v20 = vpack.c.bf16 %v313_v19, %v313_v19 }
 0x259   :  { %522 = vmatmul.mubr.bf16.vlgmr.msra.gmra.mrb[4].mxu0 %v314_v20 }
 0x32c   :  { %v420_v22 = vpop.f32.mrb[4].mxu0 }
 0x32d   :  { %v421_v23 = vadd.f32 %v447_v21, %v420_v22  ;;  %v523_v24 = vpop.f32.mrb[5].mxu0 }
 0x32e   :  { %v423_v25 = vpop.f32.mrb[6].mxu0 }
 0x32f   :  { %554 = vtanh.f32 %v421_v23  ;;  %v524_v26 = vpop.f32.mrb[7].mxu0 }
 0x339   :  { %v555_v27 = vpop.eup %554 }
 0x33a   :  { %427 = vst [vmem:[%s789_s9] sm:$0xff] %v555_v27 }
 0x33b   :  { %432 = vsyncpa [#allocation3], 1 }
 0x33c   :  { %433 = vsyncpa [#allocation5], 1 }

</bundles_post_ra>
